<compile_context>
chip_gen: v5e
topology: v5e:2x2
jax: 0.10.0
libtpu: 0.0.40
codegen_flags: <defaults>
</compile_context>

<pallas_src>
import functools

import jax
import jax.numpy as jnp
from jax import lax
from jax.experimental import pallas as pl
from jax.experimental.pallas import tpu as pltpu


def _co2l_kernel(anchor_ref, contrast_ref, row_lab_ref, col_lab_ref, out_ref,
                 m_sc, l_sc, s_sc, p_sc, *, inv_temp, scale):
    tm = anchor_ref.shape[0]
    tk = contrast_ref.shape[0]
    i = pl.program_id(0)
    k = pl.program_id(1)

    @pl.when(k == 0)
    def _():
        m_sc[...] = jnp.full_like(m_sc, -jnp.inf)
        l_sc[...] = jnp.zeros_like(l_sc)
        s_sc[...] = jnp.zeros_like(s_sc)
        p_sc[...] = jnp.zeros_like(p_sc)

    # (TM, D) x (TK, D) contracted on D -> (TM, TK).  DEFAULT precision
    # (single-pass bf16 MXU), f32 accumulate; contrast is passed un-transposed.
    dots = lax.dot_general(
        anchor_ref[...], contrast_ref[...],
        dimension_numbers=(((1,), (1,)), ((), ())),
        preferred_element_type=jnp.float32)
    adc = dots * inv_temp  # multiply by precomputed 1/temperature

    # self-contrast positions: global row index == global column index
    row_g = i * tm + lax.broadcasted_iota(jnp.int32, (tm, tk), 0)
    col_g = k * tk + lax.broadcasted_iota(jnp.int32, (tm, tk), 1)
    is_self = row_g == col_g

    # positive mask rebuilt in-kernel from per-row / per-column labels
    pos = jnp.logical_and(row_lab_ref[...] == col_lab_ref[...],
                          jnp.logical_not(is_self))
    pos_f = pos.astype(jnp.float32)

    # running row max over ALL columns (self included, matching torch logits_max)
    m_prev = m_sc[...]
    m_new = jnp.maximum(m_prev, jnp.max(adc, axis=1, keepdims=True))
    alpha = jnp.exp(m_prev - m_new)

    # softmax denominator excludes the self column (fused -inf masking)
    adc_den = jnp.where(is_self, -jnp.inf, adc)
    l_sc[...] = alpha * l_sc[...] + jnp.sum(jnp.exp(adc_den - m_new),
                                            axis=1, keepdims=True)
    m_sc[...] = m_new
    s_sc[...] += jnp.sum(pos_f * adc, axis=1, keepdims=True)
    p_sc[...] += jnp.sum(pos_f, axis=1, keepdims=True)

    @pl.when(k == pl.num_programs(1) - 1)
    def _():
        # sum(pos * log_prob) / sum(pos) == s/p - m - log(l)
        mean_log_prob_pos = s_sc[...] / p_sc[...] - m_sc[...] - jnp.log(l_sc[...])
        out_ref[...] = (-scale) * mean_log_prob_pos


def _choose_tile(total, preferred, align):
    """Largest `align`-aligned divisor of `total` that is <= preferred; else full."""
    if total <= preferred:
        return total
    t = (preferred // align) * align
    while t >= align:
        if total % t == 0:
            return t
        t -= align
    return total


def co2l_loss_pallas(anchor, contrast, row_labels, col_labels, *,
                     inv_temp, scale, tile_m=256, tile_k=512):
    """anchor [Na, D] f32, contrast [N, D] f32 (un-transposed),
    row_labels [Na, 1] int32, col_labels [1, N] int32 -> per-anchor loss [Na, 1] f32.

    Default TM x TK = 256 x 512 keeps double-buffered blocks well under the
    32 MiB scoped-VMEM default on all of v5e/v6e/v7x (v7x has only 64 MiB
    physical VMEM, so no 128 MiB-era tile sizes)."""
    Na, D = anchor.shape
    N = contrast.shape[0]
    TM = _choose_tile(Na, tile_m, 8)
    TK = _choose_tile(N, tile_k, 128)
    grid = (Na // TM, N // TK)

    kernel = functools.partial(_co2l_kernel, inv_temp=inv_temp, scale=scale)
    return pl.pallas_call(
        kernel,
        out_shape=jax.ShapeDtypeStruct((Na, 1), jnp.float32),
        grid_spec=pltpu.PrefetchScalarGridSpec(
            num_scalar_prefetch=0,
            grid=grid,
            in_specs=[
                pl.BlockSpec((TM, D), lambda i, k: (i, 0)),   # anchor rows
                pl.BlockSpec((TK, D), lambda i, k: (k, 0)),   # contrast rows
                pl.BlockSpec((TM, 1), lambda i, k: (i, 0)),   # per-row labels
                pl.BlockSpec((1, TK), lambda i, k: (0, k)),   # per-column labels
            ],
            out_specs=pl.BlockSpec((TM, 1), lambda i, k: (i, 0)),
            scratch_shapes=[pltpu.VMEM((TM, 1), jnp.float32)] * 4,
        ),
        compiler_params=pltpu.CompilerParams(
            dimension_semantics=("parallel", "arbitrary")),
    )(anchor, contrast, row_labels, col_labels)


class CO2LLoss:
    """JAX/Pallas port of the PyTorch CO2LLoss module (losses_negative_only.py)."""

    def __init__(self, temperature=0.07, contrast_mode='all', base_temperature=0.07,
                 tile_m=256, tile_k=512):
        self.temperature = temperature
        self.contrast_mode = contrast_mode
        self.base_temperature = base_temperature
        self.tile_m = tile_m
        self.tile_k = tile_k

    def __call__(self, *args, **kwargs):
        return self.forward(*args, **kwargs)

    def forward(self, features, labels=None, mask=None, target_labels=None,
                reduction='mean'):
        assert target_labels is not None and len(target_labels) > 0, \
            'Target labels should be given as a list of integer'
        if features.ndim < 3:
            raise ValueError('`features` needs to be [bsz, n_views, ...], '
                             'at least 3 dimensions are required')
        if features.ndim > 3:
            features = features.reshape(features.shape[0], features.shape[1], -1)
        batch_size = features.shape[0]

        if labels is not None and mask is not None:
            raise ValueError('Cannot define both `labels` and `mask`')
        if mask is not None:
            # TODO(synk): externally supplied dense positive masks are not supported by the
            # label-based in-kernel mask generation (the torch curr_class_mask also needs labels).
            raise NotImplementedError('explicit `mask` path not supported; pass `labels`')
        if labels is None:
            raise ValueError('`labels` must be provided (the reference implementation '
                             'also requires them to build curr_class_mask)')
        labels = jnp.asarray(labels).reshape(-1).astype(jnp.int32)
        if labels.shape[0] != batch_size:
            raise ValueError('Num of labels does not match num of features')

        contrast_count = features.shape[1]
        features = features.astype(jnp.float32)
        # view-major concat == torch.cat(torch.unbind(features, dim=1), dim=0)
        contrast_feature = jnp.concatenate(
            [features[:, v, :] for v in range(contrast_count)], axis=0)

        if self.contrast_mode == 'one':
            anchor_feature = features[:, 0]
            anchor_count = 1
        elif self.contrast_mode == 'all':
            anchor_feature = contrast_feature
            anchor_count = contrast_count
        else:
            raise ValueError('Unknown mode: {}'.format(self.contrast_mode))

        # O(N) label vectors instead of a dense [Na, N] positive mask
        col_labels = jnp.tile(labels, contrast_count)[None, :]   # [1, N]
        row_labels = jnp.tile(labels, anchor_count)[:, None]     # [Na, 1]

        loss_col = co2l_loss_pallas(
            anchor_feature, contrast_feature, row_labels, col_labels,
            inv_temp=1.0 / self.temperature,
            scale=self.temperature / self.base_temperature,
            tile_m=self.tile_m, tile_k=self.tile_k)
        loss = loss_col.reshape(anchor_count, batch_size)

        # curr_class_mask * loss  (cheap O(anchor_count * bsz) epilogue)
        curr_class_mask = jnp.zeros((batch_size,), jnp.float32)
        for tc in target_labels:
            curr_class_mask = curr_class_mask + (labels == tc).astype(jnp.float32)
        loss = curr_class_mask[None, :] * loss

        if reduction == 'mean':
            return loss.mean()
        elif reduction == 'none':
            return loss.mean(axis=0)
        else:
            raise ValueError('loss reduction not supported: {}'.format(reduction))


def reference_co2l(features, labels, target_labels, temperature, base_temperature,
                   contrast_mode='all', reduction='mean'):
    """Pure-JAX mirror of the torch reference (same DEFAULT matmul precision)."""
    bsz, n_views, _ = features.shape
    contrast = jnp.concatenate([features[:, v, :] for v in range(n_views)], axis=0)
    if contrast_mode == 'one':
        anchor, anchor_count = features[:, 0], 1
    else:
        anchor, anchor_count = contrast, n_views
    Na, N = anchor_count * bsz, n_views * bsz

    pos = (labels.reshape(-1, 1) == labels.reshape(1, -1)).astype(jnp.float32)
    pos = jnp.tile(pos, (anchor_count, n_views))
    adc = jnp.matmul(anchor, contrast.T) / temperature
    logits = adc - jnp.max(adc, axis=1, keepdims=True)
    logits_mask = jnp.ones((Na, N), jnp.float32).at[
        jnp.arange(Na), jnp.arange(Na)].set(0.0)
    pos = pos * logits_mask
    exp_l = jnp.exp(logits) * logits_mask
    log_prob = logits - jnp.log(jnp.sum(exp_l, axis=1, keepdims=True))
    mlpp = jnp.sum(pos * log_prob, axis=1) / jnp.sum(pos, axis=1)
    loss = -(temperature / base_temperature) * mlpp

    curr = jnp.zeros((bsz,), jnp.float32)
    for tc in target_labels:
        curr = curr + (labels == tc).astype(jnp.float32)
    loss = curr[None, :] * loss.reshape(anchor_count, bsz)
    return loss.mean() if reduction == 'mean' else loss.mean(axis=0)


if __name__ == "__main__":
    key = jax.random.PRNGKey(0)

    # --- small test ('all' and 'one' modes, single-tile grid) -----------------
    bsz, n_views, dim = 8, 2, 32
    k1, k2 = jax.random.split(key)
    feats = jax.random.normal(k1, (bsz, n_views, dim), dtype=jnp.float32)
    feats = feats / jnp.linalg.norm(feats, axis=-1, keepdims=True)
    labels = jnp.array([0, 1, 2, 3, 0, 1, 2, 3], dtype=jnp.int32)
    target_labels = [0, 1]

    loss_all = CO2LLoss(0.07, 'all', 0.07)
    out_mean = loss_all(feats, labels=labels, target_labels=target_labels,
                        reduction='mean')
    out_none = loss_all(feats, labels=labels, target_labels=target_labels,
                        reduction='none')
    out_one = CO2LLoss(0.07, 'one', 0.07)(
        feats, labels=labels, target_labels=target_labels, reduction='mean')
    jax.block_until_ready((out_mean, out_none, out_one))

    ref_mean = reference_co2l(feats, labels, target_labels, 0.07, 0.07, 'all', 'mean')
    ref_none = reference_co2l(feats, labels, target_labels, 0.07, 0.07, 'all', 'none')
    ref_one = reference_co2l(feats, labels, target_labels, 0.07, 0.07, 'one', 'mean')

    assert out_mean.shape == () and out_none.shape == (bsz,)
    assert jnp.allclose(out_mean, ref_mean, atol=1e-2, rtol=1e-2), (out_mean, ref_mean)
    assert jnp.allclose(out_none, ref_none, atol=1e-2, rtol=1e-2), (out_none, ref_none)
    assert jnp.allclose(out_one, ref_one, atol=1e-2, rtol=1e-2), (out_one, ref_one)

    # --- multi-tile test (exercises the online-softmax grid: TM=64, TK=128) ----
    bsz2, nv2, d2 = 128, 2, 64
    f2 = jax.random.normal(k2, (bsz2, nv2, d2), dtype=jnp.float32)
    f2 = f2 / jnp.linalg.norm(f2, axis=-1, keepdims=True)
    lab2 = (jnp.arange(bsz2) % 16).astype(jnp.int32)
    tgt2 = [0, 1, 2, 3]
    out2 = CO2LLoss(0.07, 'all', 0.07, tile_m=64, tile_k=128)(
        f2, labels=lab2, target_labels=tgt2, reduction='mean')
    out2 = jax.block_until_ready(out2)
    ref2 = reference_co2l(f2, lab2, tgt2, 0.07, 0.07, 'all', 'mean')
    assert jnp.allclose(out2, ref2, atol=1e-2, rtol=1e-2), (out2, ref2)

    print("KERNEL_OK")
</pallas_src>

<mosaic_0001>
module attributes {stable_mosaic.version = 11 : i64} {
  func.func @_co2l_kernel(%arg0: i32, %arg1: i32, %arg2: memref<16x32xf32, #tpu.memory_space<vmem>>, %arg3: memref<16x32xf32, #tpu.memory_space<vmem>>, %arg4: memref<16x1xi32, #tpu.memory_space<vmem>>, %arg5: memref<1x16xi32, #tpu.memory_space<vmem>>, %arg6: memref<16x1xf32, #tpu.memory_space<vmem>>, %arg7: memref<16x1xf32, #tpu.memory_space<vmem>>, %arg8: memref<16x1xf32, #tpu.memory_space<vmem>>, %arg9: memref<16x1xf32, #tpu.memory_space<vmem>>, %arg10: memref<16x1xf32, #tpu.memory_space<vmem>>) attributes {dimension_semantics = [#tpu.dimension_semantics<parallel>, #tpu.dimension_semantics<arbitrary>], iteration_bounds = array<i64: 1, 1>, scalar_prefetch = 0 : i64, scratch_operands = 4 : i64, tpu.core_type = #tpu.core_type<tc>, window_params = [{transform_indices = @transform_0, window_bounds = array<i64: 16, 32>}, {transform_indices = @transform_1, window_bounds = array<i64: 16, 32>}, {transform_indices = @transform_2, window_bounds = array<i64: 16, 1>}, {transform_indices = @transform_3, window_bounds = array<i64: 1, 16>}, {transform_indices = @transform_4, window_bounds = array<i64: 16, 1>}]} {
    %c0_i32 = arith.constant 0 : i32
    %0 = arith.cmpi eq, %arg1, %c0_i32 : i32
    %1 = arith.extui %0 : i1 to i32
    %c0_i32_0 = arith.constant 0 : i32
    %2 = arith.cmpi ne, %1, %c0_i32_0 : i32
    scf.if %2 {
      %cst_34 = arith.constant 0xFF800000 : f32
      %58 = vector.broadcast %cst_34 : f32 to vector<16x1xf32>
      %c0_35 = arith.constant 0 : index
      %c0_36 = arith.constant 0 : index
      %59 = vector.load %arg7[%c0_35, %c0_36] : memref<16x1xf32, #tpu.memory_space<vmem>>, vector<16x1xf32>
      tpu.vector_store %arg7[%c0_35, %c0_36], %58 {strides = array<i32>} : memref<16x1xf32, #tpu.memory_space<vmem>>, vector<16x1xf32>,
      %cst_37 = arith.constant 0.000000e+00 : f32
      %60 = vector.broadcast %cst_37 : f32 to vector<16x1xf32>
      %c0_38 = arith.constant 0 : index
      %c0_39 = arith.constant 0 : index
      %61 = vector.load %arg8[%c0_38, %c0_39] : memref<16x1xf32, #tpu.memory_space<vmem>>, vector<16x1xf32>
      tpu.vector_store %arg8[%c0_38, %c0_39], %60 {strides = array<i32>} : memref<16x1xf32, #tpu.memory_space<vmem>>, vector<16x1xf32>,
      %cst_40 = arith.constant 0.000000e+00 : f32
      %62 = vector.broadcast %cst_40 : f32 to vector<16x1xf32>
      %c0_41 = arith.constant 0 : index
      %c0_42 = arith.constant 0 : index
      %63 = vector.load %arg9[%c0_41, %c0_42] : memref<16x1xf32, #tpu.memory_space<vmem>>, vector<16x1xf32>
      tpu.vector_store %arg9[%c0_41, %c0_42], %62 {strides = array<i32>} : memref<16x1xf32, #tpu.memory_space<vmem>>, vector<16x1xf32>,
      %cst_43 = arith.constant 0.000000e+00 : f32
      %64 = vector.broadcast %cst_43 : f32 to vector<16x1xf32>
      %c0_44 = arith.constant 0 : index
      %c0_45 = arith.constant 0 : index
      %65 = vector.load %arg10[%c0_44, %c0_45] : memref<16x1xf32, #tpu.memory_space<vmem>>, vector<16x1xf32>
      tpu.vector_store %arg10[%c0_44, %c0_45], %64 {strides = array<i32>} : memref<16x1xf32, #tpu.memory_space<vmem>>, vector<16x1xf32>,
    } else {
    }
    %c0 = arith.constant 0 : index
    %c0_1 = arith.constant 0 : index
    %3 = vector.load %arg2[%c0, %c0_1] : memref<16x32xf32, #tpu.memory_space<vmem>>, vector<16x32xf32>
    %c0_2 = arith.constant 0 : index
    %c0_3 = arith.constant 0 : index
    %4 = vector.load %arg3[%c0_2, %c0_3] : memref<16x32xf32, #tpu.memory_space<vmem>>, vector<16x32xf32>
    %cst = arith.constant dense<0.000000e+00> : vector<16x16xf32>
    %5 = tpu.matmul %3, %4, %cst {dimension_numbers = #tpu.dot_dimension_numbers<[1], [1], [0], [0], [0, 0, 1, 0], [], []>} : vector<16x32xf32>, vector<16x32xf32>, vector<16x16xf32> -> vector<16x16xf32>
    %cst_4 = arith.constant 14.2857141 : f32
    %6 = vector.broadcast %cst_4 : f32 to vector<16x16xf32>
    %7 = arith.mulf %5, %6 : vector<16x16xf32>
    %c16_i32 = arith.constant 16 : i32
    %8 = arith.muli %arg0, %c16_i32 : i32
    %9 = tpu.iota {dimensions = array<i32: 0>} : vector<16x16xi32>
    %10 = vector.broadcast %8 : i32 to vector<16x16xi32>
    %11 = arith.addi %10, %9 : vector<16x16xi32>
    %c16_i32_5 = arith.constant 16 : i32
    %12 = arith.muli %arg1, %c16_i32_5 : i32
    %13 = tpu.iota {dimensions = array<i32: 1>} : vector<16x16xi32>
    %14 = vector.broadcast %12 : i32 to vector<16x16xi32>
    %15 = arith.addi %14, %13 : vector<16x16xi32>
    %16 = arith.cmpi eq, %11, %15 : vector<16x16xi32>
    %c0_6 = arith.constant 0 : index
    %c0_7 = arith.constant 0 : index
    %17 = vector.load %arg4[%c0_6, %c0_7] : memref<16x1xi32, #tpu.memory_space<vmem>>, vector<16x1xi32>
    %c0_8 = arith.constant 0 : index
    %c0_9 = arith.constant 0 : index
    %18 = vector.load %arg5[%c0_8, %c0_9] : memref<1x16xi32, #tpu.memory_space<vmem>>, vector<1x16xi32>
    %19 = vector.broadcast %17 : vector<16x1xi32> to vector<16x16xi32>
    %20 = vector.broadcast %18 : vector<1x16xi32> to vector<16x16xi32>
    %21 = arith.cmpi eq, %19, %20 : vector<16x16xi32>
    %cst_10 = arith.constant dense<true> : vector<16x16xi1>
    %22 = arith.xori %16, %cst_10 : vector<16x16xi1>
    %23 = arith.andi %21, %22 : vector<16x16xi1>
    %24 = arith.extui %23 : vector<16x16xi1> to vector<16x16xi32>
    %25 = arith.sitofp %24 : vector<16x16xi32> to vector<16x16xf32>
    %c0_11 = arith.constant 0 : index
    %c0_12 = arith.constant 0 : index
    %26 = vector.load %arg7[%c0_11, %c0_12] : memref<16x1xf32, #tpu.memory_space<vmem>>, vector<16x1xf32>
    %cst_13 = arith.constant dense<0xFF800000> : vector<16xf32>
    %27 = vector.multi_reduction <maximumf>, %7, %cst_13 [1] : vector<16x16xf32> to vector<16xf32>
    %28 = vector.shape_cast %27 : vector<16xf32> to vector<16x1xf32>
    %29 = arith.maximumf %26, %28 : vector<16x1xf32>
    %30 = arith.subf %26, %29 : vector<16x1xf32>
    %31 = math.exp %30 : vector<16x1xf32>
    %cst_14 = arith.constant 0xFF800000 : f32
    %32 = vector.broadcast %cst_14 : f32 to vector<16x16xf32>
    %33 = arith.select %16, %32, %7 : vector<16x16xi1>, vector<16x16xf32>
    %c0_15 = arith.constant 0 : index
    %c0_16 = arith.constant 0 : index
    %34 = vector.load %arg8[%c0_15, %c0_16] : memref<16x1xf32, #tpu.memory_space<vmem>>, vector<16x1xf32>
    %35 = arith.mulf %31, %34 : vector<16x1xf32>
    %36 = vector.broadcast %29 : vector<16x1xf32> to vector<16x16xf32>
    %37 = arith.subf %33, %36 : vector<16x16xf32>
    %38 = math.exp %37 : vector<16x16xf32>
    %cst_17 = arith.constant dense<0.000000e+00> : vector<16xf32>
    %39 = vector.multi_reduction <add>, %38, %cst_17 [1] : vector<16x16xf32> to vector<16xf32>
    %40 = vector.shape_cast %39 : vector<16xf32> to vector<16x1xf32>
    %41 = arith.addf %35, %40 : vector<16x1xf32>
    %c0_18 = arith.constant 0 : index
    %c0_19 = arith.constant 0 : index
    %42 = vector.load %arg8[%c0_18, %c0_19] : memref<16x1xf32, #tpu.memory_space<vmem>>, vector<16x1xf32>
    tpu.vector_store %arg8[%c0_18, %c0_19], %41 {strides = array<i32>} : memref<16x1xf32, #tpu.memory_space<vmem>>, vector<16x1xf32>,
    %c0_20 = arith.constant 0 : index
    %c0_21 = arith.constant 0 : index
    %43 = vector.load %arg7[%c0_20, %c0_21] : memref<16x1xf32, #tpu.memory_space<vmem>>, vector<16x1xf32>
    tpu.vector_store %arg7[%c0_20, %c0_21], %29 {strides = array<i32>} : memref<16x1xf32, #tpu.memory_space<vmem>>, vector<16x1xf32>,
    %c0_22 = arith.constant 0 : index
    %c0_23 = arith.constant 0 : index
    %44 = vector.load %arg9[%c0_22, %c0_23] : memref<16x1xf32, #tpu.memory_space<vmem>>, vector<16x1xf32>
    %45 = arith.mulf %25, %7 : vector<16x16xf32>
    %cst_24 = arith.constant dense<0.000000e+00> : vector<16xf32>
    %46 = vector.multi_reduction <add>, %45, %cst_24 [1] : vector<16x16xf32> to vector<16xf32>
    %47 = vector.shape_cast %46 : vector<16xf32> to vector<16x1xf32>
    %48 = arith.addf %44, %47 : vector<16x1xf32>
    %c0_25 = arith.constant 0 : index
    %c0_26 = arith.constant 0 : index
    %49 = vector.load %arg9[%c0_25, %c0_26] : memref<16x1xf32, #tpu.memory_space<vmem>>, vector<16x1xf32>
    tpu.vector_store %arg9[%c0_25, %c0_26], %48 {strides = array<i32>} : memref<16x1xf32, #tpu.memory_space<vmem>>, vector<16x1xf32>,
    %c0_27 = arith.constant 0 : index
    %c0_28 = arith.constant 0 : index
    %50 = vector.load %arg10[%c0_27, %c0_28] : memref<16x1xf32, #tpu.memory_space<vmem>>, vector<16x1xf32>
    %cst_29 = arith.constant dense<0.000000e+00> : vector<16xf32>
    %51 = vector.multi_reduction <add>, %25, %cst_29 [1] : vector<16x16xf32> to vector<16xf32>
    %52 = vector.shape_cast %51 : vector<16xf32> to vector<16x1xf32>
    %53 = arith.addf %50, %52 : vector<16x1xf32>
    %c0_30 = arith.constant 0 : index
    %c0_31 = arith.constant 0 : index
    %54 = vector.load %arg10[%c0_30, %c0_31] : memref<16x1xf32, #tpu.memory_space<vmem>>, vector<16x1xf32>
    tpu.vector_store %arg10[%c0_30, %c0_31], %53 {strides = array<i32>} : memref<16x1xf32, #tpu.memory_space<vmem>>, vector<16x1xf32>,
    %c0_i32_32 = arith.constant 0 : i32
    %55 = arith.cmpi eq, %arg1, %c0_i32_32 : i32
    %56 = arith.extui %55 : i1 to i32
    %c0_i32_33 = arith.constant 0 : i32
    %57 = arith.cmpi ne, %56, %c0_i32_33 : i32
    scf.if %57 {
      %c0_34 = arith.constant 0 : index
      %c0_35 = arith.constant 0 : index
      %58 = vector.load %arg9[%c0_34, %c0_35] : memref<16x1xf32, #tpu.memory_space<vmem>>, vector<16x1xf32>
      %c0_36 = arith.constant 0 : index
      %c0_37 = arith.constant 0 : index
      %59 = vector.load %arg10[%c0_36, %c0_37] : memref<16x1xf32, #tpu.memory_space<vmem>>, vector<16x1xf32>
      %60 = arith.divf %58, %59 : vector<16x1xf32>
      %c0_38 = arith.constant 0 : index
      %c0_39 = arith.constant 0 : index
      %61 = vector.load %arg7[%c0_38, %c0_39] : memref<16x1xf32, #tpu.memory_space<vmem>>, vector<16x1xf32>
      %62 = arith.subf %60, %61 : vector<16x1xf32>
      %c0_40 = arith.constant 0 : index
      %c0_41 = arith.constant 0 : index
      %63 = vector.load %arg8[%c0_40, %c0_41] : memref<16x1xf32, #tpu.memory_space<vmem>>, vector<16x1xf32>
      %64 = math.log %63 : vector<16x1xf32>
      %65 = arith.subf %62, %64 : vector<16x1xf32>
      %cst_42 = arith.constant -1.000000e+00 : f32
      %66 = vector.broadcast %cst_42 : f32 to vector<16x1xf32>
      %67 = arith.mulf %66, %65 : vector<16x1xf32>
      %c0_43 = arith.constant 0 : index
      %c0_44 = arith.constant 0 : index
      %68 = vector.load %arg6[%c0_43, %c0_44] : memref<16x1xf32, #tpu.memory_space<vmem>>, vector<16x1xf32>
      tpu.vector_store %arg6[%c0_43, %c0_44], %67 {strides = array<i32>} : memref<16x1xf32, #tpu.memory_space<vmem>>, vector<16x1xf32>,
    } else {
    }
    return
  }
  func.func @transform_0(%arg0: i32, %arg1: i32) -> (i32, i32) {
    %c0_i32 = arith.constant 0 : i32
    %c0_i32_0 = arith.constant 0 : i32
    return %arg0, %c0_i32 : i32, i32
  }
  func.func @transform_1(%arg0: i32, %arg1: i32) -> (i32, i32) {
    %c0_i32 = arith.constant 0 : i32
    %c0_i32_0 = arith.constant 0 : i32
    return %arg1, %c0_i32 : i32, i32
  }
  func.func @transform_2(%arg0: i32, %arg1: i32) -> (i32, i32) {
    %c0_i32 = arith.constant 0 : i32
    %c0_i32_0 = arith.constant 0 : i32
    return %arg0, %c0_i32 : i32, i32
  }
  func.func @transform_3(%arg0: i32, %arg1: i32) -> (i32, i32) {
    %c0_i32 = arith.constant 0 : i32
    %c0_i32_0 = arith.constant 0 : i32
    return %c0_i32, %arg1 : i32, i32
  }
  func.func @transform_4(%arg0: i32, %arg1: i32) -> (i32, i32) {
    %c0_i32 = arith.constant 0 : i32
    %c0_i32_0 = arith.constant 0 : i32
    return %arg0, %c0_i32 : i32, i32
  }
}

</mosaic_0001>

<bundles_post_ra>
// kernel: tpu_custom_call.1
= control target key start
LH: loop header
LB: loop body
LE: loop exit
PB: predicated region body
PF: predicated region fallthrough
CT: control target
= control target key end

     0   :  { %9 = vsyncpa [#allocation7], 0  ;;  %s319_s18 = smov [#allocation6]   ;;  %s320_s20 = smov 128   ;;  %s425_s0 = inlined_call_operand.vmem [shape: f32[16,32], index: 0, kind: input, shape index: {}]   ;;  %s426_s1 = inlined_call_operand.hbm [shape: f32[16,32], index: 1, kind: input, shape index: {}]   ;;  %s427_s2 = inlined_call_operand.vmem [shape: s32[16,1], index: 2, kind: input, shape index: {}]   ;;  %s428_s3 = inlined_call_operand.vmem [shape: s32[1,16], index: 3, kind: input, shape index: {}]   ;;  %s429_s4 = inlined_call_operand.vmem [shape: f32[16,1], index: 4, kind: output, shape index: {}]  }
   0x1   :  { %s16_s17 = sshll.u32 %s426_s1, 4  ;;  %s18_s19 = sshll.u32 %s319_s18, 4  ;;  %s17_s17 = int_to_ptr.hbm [resolvable:$true] %s16_s17  ;;  %s19_s19 = int_to_ptr.vmem [resolvable:$true] %s18_s19 }
   0x2   :  { %s321_s21 = smov 8  }
   0x3   :  { %24 = dma.hbm_to_vmem [thread:$0]  %s17_s17, 256, %s19_s19, [#allocation7], %s320_s20, %s320_s20, %s321_s21  }
   0x4   :  { %317 = dma.done.wait [#allocation7], 256  }
   0x5   :  { %318 = vsyncadd [#allocation7], 4294967040  ;;  %v322_v0 = vmov 0   ;;  %vm50_vm0 = vcmask 261120   ;;  %v49_v1 = vld [vmem:[#allocation6 + $0x8] sm:$0xff]  ;;  %v102_v2 = vld [vmem:[%s427_s2] sm:$0xff]  ;;  %v89_v7 = vlaneseq }
   0x6   :  { %273 = vset.pattern.permute.xlu1 %v322_v0  ;;  %274 = vset.pattern.permute.xlu2 %v322_v0  ;;  %v48_v3 = vld [vmem:[#allocation6] sm:$0xff]  ;;  %v47_v5 = vld [vmem:[%s425_s0 + $0x8] sm:$0xff]  ;;  %vm323_vm2 = vmmov 1   ;;  %v324_v14 = vmov 0.0   ;;  %vm37_vm6 = vcmask 7168   ;;  %v325_v16 = vmov -inf  }
   0x7   :  { %275 = vset.pattern.permute.xlu0 %v322_v0  ;;  %258 = vmatpush.xpose.msk.msra.mxu0 %vm50_vm0, %v49_v1  ;;  %v46_v4 = vld [vmem:[%s425_s0] sm:$0xff]  ;;  %v103_v6 = vld [vmem:[%s427_s2 + $0x8] sm:$0xff]  ;;  %v366_v8 = vshrl.u32 %v89_v7, 7  ;;  %v369_v11 = vand.u32 127, %v89_v7  ;;  %38 = vst.msk [vmem:[#allocation2] sm:$0xff] %vm37_vm6, %v325_v16  ;;  %vm124_vm7 = vcmask 130048  }
   0x8   :  { %264 = vmatpush.xpose.msk.msra.mxu1 %vm50_vm0, %v49_v1  ;;  %106 = vperm.xlu1 %273, %v102_v2   ;;  %v276_v12 = vld [vmem:[%s428_s3] ss:$0 sm:$0xff]  ;;  %39 = vst.msk [vmem:[#allocation2 + $0x8] sm:$0xff] %vm37_vm6, %v325_v16 }
   0x9   :  { %v91_v10 = vadd.s32 8, %v366_v8  ;;  %40 = vst.msk [vmem:[#allocation3] sm:$0xff] %vm37_vm6, %v324_v14  ;;  %vm100_vm8 = vcmp.eq.s32.totalorder %v366_v8, %v369_v11 }
   0xa   :  { %41 = vst.msk [vmem:[#allocation3 + $0x8] sm:$0xff] %vm37_vm6, %v324_v14  ;;  %vm114_vm9 = vmxor %vm100_vm8, %vm323_vm2 }
   0xb   :  { %259 = vmatpush.xpose.msk.msra.mxu0 %vm50_vm0, %v48_v3  ;;  %vm101_vm1 = vcmp.eq.s32.totalorder %v91_v10, %v369_v11  ;;  %42 = vst.msk [vmem:[#allocation4] sm:$0xff] %vm37_vm6, %v324_v14 }
   0xc   :  { %265 = vmatpush.xpose.msk.msra.mxu1 %vm50_vm0, %v48_v3  ;;  %vm115_vm3 = vmxor %vm101_vm1, %vm323_vm2  ;;  %43 = vst.msk [vmem:[#allocation4 + $0x8] sm:$0xff] %vm37_vm6, %v324_v14 }
   0xd   :  { %44 = vst.msk [vmem:[#allocation5] sm:$0xff] %vm37_vm6, %v324_v14 }
   0xe   :  { %260 = vmatmul.msk.f32.vlgmr.msra.gmra.mxu0 %vm50_vm0, %v46_v4  ;;  %45 = vst.msk [vmem:[#allocation5 + $0x8] sm:$0xff] %vm37_vm6, %v324_v14  ;;  %v122_v28 = vld [vmem:[#allocation2] sm:$0xff] }
   0xf   :  { %261 = vmatmul.msk.f32.vlgmr.msra.gmra.mxu1 %vm50_vm0, %v47_v5  ;;  %v123_v32 = vld [vmem:[#allocation2 + $0x8] sm:$0xff] }
  0x10   :  { %109 = vperm.xlu1 %273, %v103_v6   ;;  %v141_v3 = vld [vmem:[#allocation3] sm:$0xff] }
  0x12   :  { %v174_v40 = vld [vmem:[#allocation4] sm:$0xff] }
  0x14   :  { %v188_v36 = vld [vmem:[#allocation5] sm:$0xff] }
  0x15   :  { %v189_v56 = vld [vmem:[#allocation5 + $0x8] sm:$0xff] }
  0x7a   :  { %v107_v9 = vpop.permute.xlu1 %106 }
  0x7b   :  { %vm112_vm10 = vcmp.eq.s32.totalorder %v107_v9, %v276_v12 }
  0x7c   :  { %vm116_vm11 = vmand %vm112_vm10, %vm114_vm9 }
  0x7d   :  { %v262_v24 = vsel %vm116_vm11, 1.0, %v324_v14 }
  0x7e   :  { %v190_v25 = vsel %vm124_vm7, %v262_v24, 0.0 }
  0x82   :  { %v110_v13 = vpop.permute.xlu1 %109 }
  0x83   :  { %vm113_vm4 = vcmp.eq.s32.totalorder %v110_v13, %v276_v12  ;;  %v142_v13 = vld [vmem:[#allocation3 + $0x8] sm:$0xff] }
  0x84   :  { %vm117_vm5 = vmand %vm113_vm4, %vm115_vm3 }
  0x85   :  { %v378_v15 = vsel %vm117_vm5, 1.0, %v324_v14 }
  0x86   :  { %v193_v37 = vsel %vm124_vm7, %v378_v15, 0.0 }
  0x87   :  { %194 = vadd.xlane.f32.xlu1 %v193_v37 }
  0x8b   :  { %v80_v17 = vpop.f32.mrf.mxu0 }
  0x8c   :  { %v83_v18 = vpop.f32.mrf.mxu1  ;;  %v86_v19 = vmul.f32 14.285714, %v80_v17 }
  0x8d   :  { %v87_v20 = vmul.f32 14.285714, %v83_v18 }
  0x8e   :  { %v125_v21 = vsel %vm124_vm7, %v86_v19, -inf  ;;  %v176_v26 = vmul.f32 %v262_v24, %v86_v19  ;;  %v139_v43 = vsel %vm100_vm8, -inf, %v86_v19 }
  0x8f   :  { %126 = vmax.xlane.f32.xlu0 %v125_v21  ;;  %v140_v22 = vsel %vm101_vm1, -inf, %v87_v20  ;;  %v128_v23 = vsel %vm124_vm7, %v87_v20, -inf  ;;  %v177_v54 = vmul.f32 %v378_v15, %v87_v20 }
  0x90   :  { %v178_v27 = vsel %vm124_vm7, %v176_v26, 0.0 }
  0x91   :  { %v181_v55 = vsel %vm124_vm7, %v177_v54, 0.0 }
  0x97   :  { %129 = vmax.xlane.f32.xlu0 %v128_v23 }
  0x9f   :  { %191 = vadd.xlane.f32.xlu0 %v190_v25  ;;  %v175_v25 = vld [vmem:[#allocation4 + $0x8] sm:$0xff] }
  0xa7   :  { %179 = vadd.xlane.f32.xlu0 %v178_v27 }
  0xfa   :  { %v195_v57 = vpop.xlane.xlu1 %194 }
  0xfb   :  { %v197_v58 = vadd.f32 %v195_v57, %v189_v56 }
  0xfd   :  { %199 = vst.msk [vmem:[#allocation5 + $0x8] sm:$0xff] %vm37_vm6, %v197_v58 }
 0x102   :  { %v127_v29 = vpop.xlane.xlu0 %126 }
 0x103   :  { %v131_v30 = vmax.f32 %v122_v28, %v127_v29 }
 0x104   :  { %v206_v0 = vld [vmem:[#allocation5 + $0x8] sm:$0xff] }
 0x105   :  { %v133_v31 = vsub.f32 %v122_v28, %v131_v30  ;;  %172 = vst.msk [vmem:[#allocation2] sm:$0xff] %vm37_vm6, %v131_v30  ;;  %147 = vperm.xlu2 %274, %v131_v30   ;;  %vm227_vm0 = vweird.f32 %v206_v0 }
 0x107   :  { %v135_v60 = vmul.f32 1.442695, %v133_v31 }
 0x10a   :  { %v130_v33 = vpop.xlane.xlu0 %129 }
 0x10b   :  { %v132_v34 = vmax.f32 %v123_v32, %v130_v33 }
 0x10c   :  { %v237_v29 = vld [vmem:[#allocation2] sm:$0xff] }
 0x10d   :  { %v134_v35 = vsub.f32 %v123_v32, %v132_v34  ;;  %173 = vst.msk [vmem:[#allocation2 + $0x8] sm:$0xff] %vm37_vm6, %v132_v34  ;;  %152 = vperm.xlu2 %274, %v132_v34   ;;  %v233_v32 = vand.u32 2147483648, %v206_v0 }
 0x10f   :  { %v137_v63 = vmul.f32 1.442695, %v134_v35 }
 0x112   :  { %v192_v38 = vpop.xlane.xlu0 %191 }
 0x113   :  { %v196_v39 = vadd.f32 %v192_v38, %v188_v36  ;;  %v231_v36 = vand.u32 2147483647, %v206_v0 }
 0x115   :  { %198 = vst.msk [vmem:[#allocation5] sm:$0xff] %vm37_vm6, %v196_v39  ;;  %v234_v39 = vor.u32 1.1754944e-38, %v233_v32  ;;  %vm232_vm3 = vcmp.eq.f32.partialorder %v231_v36, 8.507059e+37 }
 0x11a   :  { %v180_v41 = vpop.xlane.xlu0 %179 }
 0x11b   :  { %v184_v42 = vadd.f32 %v180_v41, %v174_v40 }
 0x11c   :  { %v205_v59 = vld [vmem:[#allocation5] sm:$0xff] }
 0x11d   :  { %186 = vst.msk [vmem:[#allocation4] sm:$0xff] %vm37_vm6, %v184_v42  ;;  %vm212_vm12 = vweird.f32 %v205_v59  ;;  %v218_v9 = vand.u32 2147483648, %v205_v59  ;;  %v216_v12 = vand.u32 2147483647, %v205_v59 }
 0x11f   :  { %v219_v14 = vor.u32 1.1754944e-38, %v218_v9  ;;  %vm217_vm15 = vcmp.eq.f32.partialorder %v216_v12, 8.507059e+37 }
 0x124   :  { %v203_v23 = vld [vmem:[#allocation4] sm:$0xff] }
 0x15f   :  { %v148_v44 = vpop.permute.xlu2 %147 }
 0x160   :  { %v155_v45 = vsub.f32 %v139_v43, %v148_v44 }
 0x162   :  { %v157_v46 = vmul.f32 1.442695, %v155_v45  ;;  %v238_v45 = vld [vmem:[#allocation2 + $0x8] sm:$0xff] }
 0x164   :  { %277 = vpow2.f32 %v157_v46 }
 0x167   :  { %v153_v47 = vpop.permute.xlu2 %152 }
 0x168   :  { %v156_v48 = vsub.f32 %v140_v22, %v153_v47 }
 0x16a   :  { %v278_v49 = vpop.eup %277  ;;  %v159_v50 = vmul.f32 1.442695, %v156_v48 }
 0x16b   :  { %v161_v51 = vsel %vm124_vm7, %v278_v49, 0.0 }
 0x16c   :  { %279 = vpow2.f32 %v159_v50  ;;  %162 = vadd.xlane.f32.xlu2 %v161_v51 }
 0x16d   :  { %281 = vrcp.f32 %v205_v59 }
 0x16e   :  { %283 = vpow2.f32 %v135_v60 }
 0x16f   :  { %285 = vpow2.f32 %v137_v63 }
 0x170   :  { %287 = vrcp.f32 %v206_v0 }
 0x172   :  { %v280_v52 = vpop.eup %279 }
 0x173   :  { %v164_v53 = vsel %vm124_vm7, %v280_v52, 0.0  ;;  %v282_v61 = vpop.eup %281 }
 0x174   :  { %165 = vadd.xlane.f32.xlu0 %v164_v53  ;;  %v208_v62 = vmul.f32 %v282_v61, %v205_v59  ;;  %v284_v1 = vpop.eup %283  ;;  %vm213_vm13 = vweird.f32 %v282_v61 }
 0x175   :  { %v143_v4 = vmul.f32 %v284_v1, %v141_v3  ;;  %v286_v8 = vpop.eup %285  ;;  %vm214_vm14 = vmor %vm212_vm12, %vm213_vm13 }
 0x176   :  { %v209_v2 = vsub.f32 1.0, %v208_v62  ;;  %v288_v10 = vpop.eup %287  ;;  %v144_v16 = vmul.f32 %v286_v8, %v142_v13 }
 0x177   :  { %v223_v15 = vmul.f32 %v288_v10, %v206_v0  ;;  %vm228_vm1 = vweird.f32 %v288_v10 }
 0x178   :  { %v210_v5 = vmul.f32 %v282_v61, %v209_v2  ;;  %vm229_vm2 = vmor %vm227_vm0, %vm228_vm1 }
 0x179   :  { %v224_v22 = vsub.f32 1.0, %v223_v15 }
 0x17a   :  { %v211_v11 = vadd.f32 %v282_v61, %v210_v5 }
 0x17b   :  { %v225_v26 = vmul.f32 %v288_v10, %v224_v22 }
 0x17c   :  { %182 = vadd.xlane.f32.xlu0 %v181_v55  ;;  %v215_v17 = vsel %vm214_vm14, %v282_v61, %v211_v11 }
 0x17d   :  { %v220_v21 = vsel %vm217_vm15, %v219_v14, %v215_v17  ;;  %v226_v35 = vadd.f32 %v288_v10, %v225_v26 }
 0x17e   :  { %v221_v24 = vmul.f32 %v220_v21, %v203_v23 }
 0x17f   :  { %v230_v40 = vsel %vm229_vm2, %v288_v10, %v226_v35 }
 0x180   :  { %v239_v31 = vsub.f32 %v221_v24, %v237_v29  ;;  %v235_v42 = vsel %vm232_vm3, %v234_v39, %v230_v40 }
 0x1df   :  { %v163_v6 = vpop.xlane.xlu2 %162 }
 0x1e0   :  { %v167_v7 = vadd.f32 %v163_v6, %v143_v4 }
 0x1e2   :  { %170 = vst.msk [vmem:[#allocation3] sm:$0xff] %vm37_vm6, %v167_v7 }
 0x1e7   :  { %v166_v18 = vpop.xlane.xlu0 %165 }
 0x1e8   :  { %v168_v19 = vadd.f32 %v166_v18, %v144_v16 }
 0x1e9   :  { %v241_v20 = vld [vmem:[#allocation3] sm:$0xff] }
 0x1ea   :  { %289 = vlog2.f32 %v241_v20  ;;  %171 = vst.msk [vmem:[#allocation3 + $0x8] sm:$0xff] %vm37_vm6, %v168_v19 }
 0x1ef   :  { %v183_v27 = vpop.xlane.xlu0 %182 }
 0x1f0   :  { %v290_v28 = vpop.eup %289  ;;  %v185_v30 = vadd.f32 %v183_v27, %v175_v25 }
 0x1f1   :  { %v244_v33 = vmul.f32 0.6931472, %v290_v28  ;;  %v242_v34 = vld [vmem:[#allocation3 + $0x8] sm:$0xff] }
 0x1f2   :  { %187 = vst.msk [vmem:[#allocation4 + $0x8] sm:$0xff] %vm37_vm6, %v185_v30  ;;  %291 = vlog2.f32 %v242_v34 }
 0x1f3   :  { %v247_v37 = vsub.f32 %v239_v31, %v244_v33 }
 0x1f5   :  { %v249_v38 = vmul.f32 -1.0, %v247_v37 }
 0x1f7   :  { %251 = vst.msk [vmem:[%s429_s4] sm:$0xff] %vm37_vm6, %v249_v38 }
 0x1f8   :  { %v292_v41 = vpop.eup %291 }
 0x1f9   :  { %v204_v43 = vld [vmem:[#allocation4 + $0x8] sm:$0xff]  ;;  %v246_v46 = vmul.f32 0.6931472, %v292_v41 }
 0x1fa   :  { %v236_v44 = vmul.f32 %v235_v42, %v204_v43 }
 0x1fc   :  { %v240_v47 = vsub.f32 %v236_v44, %v238_v45 }
 0x1fe   :  { %v248_v48 = vsub.f32 %v240_v47, %v246_v46 }
 0x200   :  { %v250_v49 = vmul.f32 -1.0, %v248_v48 }
 0x202   :  { %252 = vst.msk [vmem:[%s429_s4 + $0x8] sm:$0xff] %vm37_vm6, %v250_v49 }
 0x203   :  { %257 = vsyncpa [#allocation7], 1 }

</bundles_post_ra>
